<compile_context>
chip_gen: v6e
topology: v6e:2x2x1
jax: 0.10.0
libtpu: 0.0.40
codegen_flags: <defaults>
</compile_context>

<pallas_src>
import math

import jax
import jax.numpy as jnp
from jax.experimental import pallas as pl
from jax.experimental.pallas import tpu as pltpu


def _round_up(x, m):
    return ((x + m - 1) // m) * m


def value_net_kernel(x_ref, w1_ref, b1_ref, w2_ref, b2_ref, w3_ref, b3_ref, o_ref):
    # x_ref: (tb, D) block streamed straight from HBM in its natural layout (f32 or bf16).
    # Upcast once, then put the batch on the lane axis: the flip is XLU work hidden under
    # the tile DMA, and every matmul downstream gets the big batch dim on the MXU output
    # columns plus a lane-dense (1, tb) output tile (no narrow masked stores).
    xt = x_ref[...].astype(jnp.float32).T                                   # (D, tb)

    # Layer 1: (H, D) @ (D, tb) + (H, 1) -> (H, tb), ReLU.
    h1 = jnp.dot(w1_ref[...], xt, preferred_element_type=jnp.float32) + b1_ref[...]
    h1 = jnp.maximum(h1, 0.0)

    # Layer 2: (H, H) @ (H, tb) + (H, 1) -> (H, tb), ReLU.
    h2 = jnp.dot(w2_ref[...], h1, preferred_element_type=jnp.float32) + b2_ref[...]
    h2 = jnp.maximum(h2, 0.0)

    # Layer 3 (H -> 1) on the MXU (idle at K<=32): (1, H) @ (H, tb) -> (1, tb), lane-dense.
    o = jnp.dot(w3_ref[...], h2, preferred_element_type=jnp.float32) + b3_ref[...]
    o_ref[...] = o.astype(o_ref.dtype)


def value_net_forward(state, params, *, max_block_b=8192, min_grid_steps=2,
                      stream_dtype=None):
    """Fused ValueNet forward.

    state:  (B, input_dim) array, streamed to the kernel with zero wrapper-side copies.
    params: f32 weights in PyTorch nn.Linear layout (out_features, in_features), biases 2D.
    stream_dtype: optional dtype (e.g. jnp.bfloat16) for the streamed activations only —
        halves HBM traffic on v6e/v7x; under jit the cast fuses into the producer of
        `state`.  All in-kernel math stays f32.
    """
    assert max_block_b % 128 == 0, "batch tile cap must be a multiple of the 128 lanes"
    w1, b1 = params["w1"], params["b1"]   # (H, D), (H, 1)
    w2, b2 = params["w2"], params["b2"]   # (H, H), (H, 1)
    w3, b3 = params["w3"], params["b3"]   # (1, H), (1, 1)
    B, D = state.shape
    H = w1.shape[0]

    x = state if stream_dtype is None else state.astype(stream_dtype)

    # Degenerate tiny batch: pad up to a single minimal 128-row tile (a few KiB at most).
    Bp = B
    if B < 128:
        x = jnp.pad(x, ((0, 128 - B), (0, 0)))
        Bp = 128

    # Batch tile: as large as possible (amortize per-step overhead, approach HBM roofline),
    # capped at max_block_b for VMEM (the 16-wide lane dim pads ~8x in VMEM) and sized so
    # the grid has >= min_grid_steps steps for v7x's two TensorCores.
    tb = max(128, min(max_block_b, _round_up(pl.cdiv(Bp, min_grid_steps), 128)))
    grid = (pl.cdiv(Bp, tb),)   # ragged last block is masked by Pallas; no padding copy

    def resident(shape):
        # Constant index_map => block stays VMEM-resident across all grid steps.
        return pl.BlockSpec(shape, lambda i: (0, 0))

    out = pl.pallas_call(
        value_net_kernel,
        out_shape=jax.ShapeDtypeStruct((1, Bp), jnp.float32),
        grid_spec=pltpu.PrefetchScalarGridSpec(
            num_scalar_prefetch=0,
            grid=grid,
            in_specs=[
                # Streamed activation tiles in natural (tb, D) layout, double-buffered.
                # (pipeline_mode=pl.Buffered(3) only if a trace shows exposed DMA gaps.)
                pl.BlockSpec((tb, D), lambda i: (i, 0)),
                resident((H, D)), resident((H, 1)),      # layer 1 (VMEM-resident)
                resident((H, H)), resident((H, 1)),      # layer 2 (VMEM-resident)
                resident((1, H)), resident((1, 1)),      # layer 3 (VMEM-resident)
            ],
            out_specs=pl.BlockSpec((1, tb), lambda i: (0, i)),   # lane-dense output tile
        ),
        compiler_params=pltpu.CompilerParams(
            dimension_semantics=("parallel",),       # v7x: shard batch tiles over 2 TCs
            vmem_limit_bytes=32 * 1024 * 1024,       # explicit budget, safe on v5e..v7x
        ),
    )(x, w1, b1, w2, b2, w3, b3)

    return out[0, :B].reshape(B, 1)


def xavier_uniform(key, out_features, in_features):
    bound = math.sqrt(6.0 / (in_features + out_features))
    return jax.random.uniform(key, (out_features, in_features), jnp.float32, -bound, bound)


def init_value_net_params(key, input_dim, hidden_dim):
    k1, k2, k3 = jax.random.split(key, 3)
    return {
        "w1": xavier_uniform(k1, hidden_dim, input_dim),     # (H, D)
        "b1": jnp.zeros((hidden_dim, 1), jnp.float32),
        "w2": xavier_uniform(k2, hidden_dim, hidden_dim),    # (H, H)
        "b2": jnp.zeros((hidden_dim, 1), jnp.float32),
        "w3": xavier_uniform(k3, 1, hidden_dim),             # (1, H) — PyTorch layout
        "b3": jnp.zeros((1, 1), jnp.float32),
    }


def value_net_reference(state, params):
    h1 = jnp.maximum(state @ params["w1"].T + params["b1"][:, 0], 0.0)
    h2 = jnp.maximum(h1 @ params["w2"].T + params["b2"][:, 0], 0.0)
    return h2 @ params["w3"].T + params["b3"][:, 0]


if __name__ == "__main__":
    key = jax.random.PRNGKey(0)
    k_params, k_s1, k_s2, k_s3 = jax.random.split(key, 4)

    input_dim, hidden_dim = 16, 32
    params = init_value_net_params(k_params, input_dim, hidden_dim)

    # Small batch: 2 evenly tiled 128-row blocks.
    s1 = jax.random.normal(k_s1, (256, input_dim), jnp.float32)
    o1 = jax.block_until_ready(value_net_forward(s1, params))
    assert o1.shape == (256, 1)
    assert jnp.allclose(o1, value_net_reference(s1, params), atol=1e-4, rtol=1e-4)

    # Ragged batch: 2 tiles of 512, the last one partially filled — no padding copy.
    s2 = jax.random.normal(k_s2, (1000, input_dim), jnp.float32)
    o2 = jax.block_until_ready(value_net_forward(s2, params))
    assert o2.shape == (1000, 1)
    assert jnp.allclose(o2, value_net_reference(s2, params), atol=1e-4, rtol=1e-4)

    # Optional bf16 activation streaming (HBM-bandwidth win on v6e/v7x); math stays f32.
    s3 = jax.random.normal(k_s3, (1024, input_dim), jnp.float32)
    o3 = jax.block_until_ready(value_net_forward(s3, params, stream_dtype=jnp.bfloat16))
    assert o3.shape == (1024, 1)
    assert jnp.allclose(o3, value_net_reference(s3, params), atol=5e-2, rtol=5e-2)

    print("KERNEL_OK")
</pallas_src>

<mosaic_0001>
module attributes {stable_mosaic.version = 11 : i64} {
  func.func @value_net_kernel(%arg0: i32, %arg1: memref<128x16xf32, #tpu.memory_space<vmem>>, %arg2: memref<32x16xf32, #tpu.memory_space<vmem>>, %arg3: memref<32x1xf32, #tpu.memory_space<vmem>>, %arg4: memref<32x32xf32, #tpu.memory_space<vmem>>, %arg5: memref<32x1xf32, #tpu.memory_space<vmem>>, %arg6: memref<1x32xf32, #tpu.memory_space<vmem>>, %arg7: memref<1x1xf32, #tpu.memory_space<vmem>>, %arg8: memref<1x128xf32, #tpu.memory_space<vmem>>) attributes {dimension_semantics = [#tpu.dimension_semantics<parallel>], iteration_bounds = array<i64: 2>, scalar_prefetch = 0 : i64, scratch_operands = 0 : i64, tpu.core_type = #tpu.core_type<tc>, window_params = [{transform_indices = @transform_0, window_bounds = array<i64: 128, 16>}, {pipeline_mode = #tpu.pipeline_mode<synchronous>, transform_indices = @transform_1, window_bounds = array<i64: 32, 16>}, {pipeline_mode = #tpu.pipeline_mode<synchronous>, transform_indices = @transform_2, window_bounds = array<i64: 32, 1>}, {pipeline_mode = #tpu.pipeline_mode<synchronous>, transform_indices = @transform_3, window_bounds = array<i64: 32, 32>}, {pipeline_mode = #tpu.pipeline_mode<synchronous>, transform_indices = @transform_4, window_bounds = array<i64: 32, 1>}, {pipeline_mode = #tpu.pipeline_mode<synchronous>, transform_indices = @transform_5, window_bounds = array<i64: 1, 32>}, {pipeline_mode = #tpu.pipeline_mode<synchronous>, transform_indices = @transform_6, window_bounds = array<i64: 1, 1>}, {transform_indices = @transform_7, window_bounds = array<i64: 1, 128>}]} {
    %c0 = arith.constant 0 : index
    %c0_0 = arith.constant 0 : index
    %0 = vector.load %arg1[%c0, %c0_0] : memref<128x16xf32, #tpu.memory_space<vmem>>, vector<128x16xf32>
    %1 = tpu.transpose %0, [1, 0] : vector<128x16xf32> -> vector<16x128xf32>
    %c0_1 = arith.constant 0 : index
    %c0_2 = arith.constant 0 : index
    %2 = vector.load %arg2[%c0_1, %c0_2] : memref<32x16xf32, #tpu.memory_space<vmem>>, vector<32x16xf32>
    %cst = arith.constant dense<0.000000e+00> : vector<32x128xf32>
    %3 = tpu.matmul %2, %1, %cst {dimension_numbers = #tpu.dot_dimension_numbers<[1], [0], [0], [1], [0, 0, 1, 1], [], []>} : vector<32x16xf32>, vector<16x128xf32>, vector<32x128xf32> -> vector<32x128xf32>
    %c0_3 = arith.constant 0 : index
    %c0_4 = arith.constant 0 : index
    %4 = vector.load %arg3[%c0_3, %c0_4] : memref<32x1xf32, #tpu.memory_space<vmem>>, vector<32x1xf32>
    %5 = vector.broadcast %4 : vector<32x1xf32> to vector<32x128xf32>
    %6 = arith.addf %3, %5 : vector<32x128xf32>
    %cst_5 = arith.constant 0.000000e+00 : f32
    %7 = vector.broadcast %cst_5 : f32 to vector<32x128xf32>
    %8 = arith.maximumf %6, %7 : vector<32x128xf32>
    %c0_6 = arith.constant 0 : index
    %c0_7 = arith.constant 0 : index
    %9 = vector.load %arg4[%c0_6, %c0_7] : memref<32x32xf32, #tpu.memory_space<vmem>>, vector<32x32xf32>
    %cst_8 = arith.constant dense<0.000000e+00> : vector<32x128xf32>
    %10 = tpu.matmul %9, %8, %cst_8 {dimension_numbers = #tpu.dot_dimension_numbers<[1], [0], [0], [1], [0, 0, 1, 1], [], []>} : vector<32x32xf32>, vector<32x128xf32>, vector<32x128xf32> -> vector<32x128xf32>
    %c0_9 = arith.constant 0 : index
    %c0_10 = arith.constant 0 : index
    %11 = vector.load %arg5[%c0_9, %c0_10] : memref<32x1xf32, #tpu.memory_space<vmem>>, vector<32x1xf32>
    %12 = vector.broadcast %11 : vector<32x1xf32> to vector<32x128xf32>
    %13 = arith.addf %10, %12 : vector<32x128xf32>
    %cst_11 = arith.constant 0.000000e+00 : f32
    %14 = vector.broadcast %cst_11 : f32 to vector<32x128xf32>
    %15 = arith.maximumf %13, %14 : vector<32x128xf32>
    %c0_12 = arith.constant 0 : index
    %c0_13 = arith.constant 0 : index
    %16 = vector.load %arg6[%c0_12, %c0_13] : memref<1x32xf32, #tpu.memory_space<vmem>>, vector<1x32xf32>
    %cst_14 = arith.constant dense<0.000000e+00> : vector<1x128xf32>
    %17 = tpu.matmul %16, %15, %cst_14 {dimension_numbers = #tpu.dot_dimension_numbers<[1], [0], [0], [1], [0, 0, 1, 1], [], []>} : vector<1x32xf32>, vector<32x128xf32>, vector<1x128xf32> -> vector<1x128xf32>
    %c0_15 = arith.constant 0 : index
    %c0_16 = arith.constant 0 : index
    %18 = vector.load %arg7[%c0_15, %c0_16] : memref<1x1xf32, #tpu.memory_space<vmem>>, vector<1x1xf32>
    %19 = vector.broadcast %18 : vector<1x1xf32> to vector<1x128xf32>
    %20 = arith.addf %17, %19 : vector<1x128xf32>
    %c0_17 = arith.constant 0 : index
    %c0_18 = arith.constant 0 : index
    %21 = vector.load %arg8[%c0_17, %c0_18] : memref<1x128xf32, #tpu.memory_space<vmem>>, vector<1x128xf32>
    tpu.vector_store %arg8[%c0_17, %c0_18], %20 {strides = array<i32>} : memref<1x128xf32, #tpu.memory_space<vmem>>, vector<1x128xf32>,
    return
  }
  func.func @transform_0(%arg0: i32) -> (i32, i32) {
    %c0_i32 = arith.constant 0 : i32
    %c0_i32_0 = arith.constant 0 : i32
    return %arg0, %c0_i32 : i32, i32
  }
  func.func @transform_1(%arg0: i32) -> (i32, i32) {
    %c0_i32 = arith.constant 0 : i32
    %c0_i32_0 = arith.constant 0 : i32
    %c0_i32_1 = arith.constant 0 : i32
    return %c0_i32, %c0_i32_0 : i32, i32
  }
  func.func @transform_2(%arg0: i32) -> (i32, i32) {
    %c0_i32 = arith.constant 0 : i32
    %c0_i32_0 = arith.constant 0 : i32
    %c0_i32_1 = arith.constant 0 : i32
    return %c0_i32, %c0_i32_0 : i32, i32
  }
  func.func @transform_3(%arg0: i32) -> (i32, i32) {
    %c0_i32 = arith.constant 0 : i32
    %c0_i32_0 = arith.constant 0 : i32
    %c0_i32_1 = arith.constant 0 : i32
    return %c0_i32, %c0_i32_0 : i32, i32
  }
  func.func @transform_4(%arg0: i32) -> (i32, i32) {
    %c0_i32 = arith.constant 0 : i32
    %c0_i32_0 = arith.constant 0 : i32
    %c0_i32_1 = arith.constant 0 : i32
    return %c0_i32, %c0_i32_0 : i32, i32
  }
  func.func @transform_5(%arg0: i32) -> (i32, i32) {
    %c0_i32 = arith.constant 0 : i32
    %c0_i32_0 = arith.constant 0 : i32
    %c0_i32_1 = arith.constant 0 : i32
    return %c0_i32, %c0_i32_0 : i32, i32
  }
  func.func @transform_6(%arg0: i32) -> (i32, i32) {
    %c0_i32 = arith.constant 0 : i32
    %c0_i32_0 = arith.constant 0 : i32
    %c0_i32_1 = arith.constant 0 : i32
    return %c0_i32, %c0_i32_0 : i32, i32
  }
  func.func @transform_7(%arg0: i32) -> (i32, i32) {
    %c0_i32 = arith.constant 0 : i32
    %c0_i32_0 = arith.constant 0 : i32
    return %c0_i32, %arg0 : i32, i32
  }
}

</mosaic_0001>

<bundles_post_ra>
// kernel: tpu_custom_call.1
= control target key start
LH: loop header
LB: loop body
LE: loop exit
PB: predicated region body
PF: predicated region fallthrough
CT: control target
= control target key end

     0   :  { %s1242_s0 = inlined_call_operand.vmem [shape: f32[256,16], index: 0, kind: input, shape index: {}]   ;;  %s1243_s1 = inlined_call_operand.vmem [shape: f32[32,16], index: 1, kind: input, shape index: {}]   ;;  %s1244_s2 = inlined_call_operand.vmem [shape: f32[32,1], index: 2, kind: input, shape index: {}]   ;;  %s1245_s3 = inlined_call_operand.vmem [shape: f32[32,32], index: 3, kind: input, shape index: {}]   ;;  %s1246_s4 = inlined_call_operand.vmem [shape: f32[32,1], index: 4, kind: input, shape index: {}]   ;;  %s1247_s5 = inlined_call_operand.vmem [shape: f32[1,32], index: 5, kind: input, shape index: {}]   ;;  %s1248_s6 = inlined_call_operand.<no memory space> [shape: f32[1,1], index: 6, kind: input, shape index: {}]   ;;  %s1249_s7 = inlined_call_operand.hbm [shape: f32[1,256], index: 7, kind: output, shape index: {}]  }
   0x1   :  { %v12_v0 = vstv %s1248_s6 }
   0x2   :  { %13 = vst [vmem:[#allocation2] sm:$0x1] %v12_v0 }
   0x3   :  { %14 = vsyncpa [#allocation4], 0 }
   0x4   :  { %16 = vsyncpa [#allocation4 + $0x1], 0  ;;  %s1040_s26 = smov 0   ;;  %s1042_s27 = smov 0  }
   0x5   :  { %s1044_s28 = smov 0   ;;  %s1046_s29 = smov 0  }
   0x6 LB: > { %s756_s6 = sadd.s32 4294967295, %s991_s29   ;;  %s757_s30 = sadd.s32 4294967294, %s991_s29   ;;  %s991_s29 = sphi %s1046_s29, %s1255_s29   ;;  %s987_s28 = sphi %s1044_s28, %s1254_s28   ;;  %s983_s27 = sphi %s1042_s27, %s1253_s27   ;;  %s979_s26 = sphi %s1040_s26, %s1252_s26  }
   0x7   : > { %s1063_s8 = sadd.s32 1, %s991_s29   ;;  %s181_s9 = sadd.s32 1, %s987_s28 }
   0x8   : > { %s178_s10 = ssub.s32 %s991_s29, %s1063_s8  ;;  %p191_p0 = scmp.ne.s32.totalorder %s987_s28, %s983_s27 }
   0x9   : > { %p179_p1 = scmp.eq.s32.totalorder %s178_s10, 0  ;;  %p192_p2 = scmp.eq.s32.totalorder %s756_s6, 1 }
   0xa   : > { %p197_p3 = scmp.ne.s32.totalorder %s983_s27, %s979_s26  ;;  %p198_p4 = scmp.eq.s32.totalorder %s757_s30, 1 }
   0xb   : > { %s1073_s11 = scalar_select %p179_p1, %s987_s28, %s181_s9  }
   0xc   : > { %p1075_p5 = por %p192_p2, %p191_p0  ;;  %p1079_p6 = por %p198_p4, %p197_p3 }
   0xd   : > { %p760_p7 = scmp.ge.s32.totalorder %s991_s29, 1  ;;  %p243_p8 = scmp.lt.s32.totalorder %s991_s29, 3 }
   0xf   : > { %p244_p9 = pnand %p760_p7, %p243_p8 }
  0x10   : > { %s1085_s14 = sshll.u32 (!%p244_p9), %s756_s6, 4  ;;  %s272_s24 = sand.u32 (!%p244_p9), 1, %s983_s27  }
  0x11   : > { %247 = sbr.rel (%p244_p9) target bundleno = 716 (0x2cc), region = 48  ;;  %p275_p10 = scmp.lt.s32.totalorder (!%p244_p9), %s1085_s14, 31 }
  0x12   : > { %s273_s25 = scalar_lea.vmem (!%p244_p9), [#allocation3], %s272_s24  ;;  %s690_s15 = scalar_lea.sflag (!%p244_p9), [#allocation4], %s272_s24 }
  0x13   : > { %s996_s17 = smov (!%p244_p9), [#allocation3]  }
  0x14   : > { %s935_s18 = sshll.u32 (!%p244_p9), %s996_s17, 4  ;;  %s936_s18 = int_to_ptr.vmem [resolvable:$false] %s935_s18 }
  0x15   : > { %s937_s19 = scalar_lea.vmem (!%p244_p9), %s936_s18, 32 }
  0x16   : > { %vm324_vm0 = vcmask 130048   ;;  %v296_v1 = vld [vmem:[%s1243_s1] sm:$0xff]  ;;  %v993_v2 = vmov 0   ;;  %v303_v3 = vld [vmem:[%s1244_s2 + $0x18] sm:$0xff]  ;;  %v301_v4 = vld [vmem:[%s1244_s2 + $0x8] sm:$0xff]  ;;  %s276_s21 = scalar_select %p275_p10, %s1085_s14, 31 }
  0x17   : > { %856 = vmatprep.mubr.msk.f32.mxu0 %vm324_vm0, %v296_v1  ;;  %929 = vset.pattern.permute.xlu0 %v993_v2  ;;  %v302_v5 = vld [vmem:[%s1244_s2 + $0x10] sm:$0xff]  ;;  %v300_v6 = vld [vmem:[%s1244_s2] sm:$0xff]  ;;  %v481_v9 = vld [vmem:[%s1246_s4 + $0x18] sm:$0xff]  ;;  %vm502_vm1 = vcmask 261120   ;;  %v994_v51 = vmov 0.0   ;;  %vm995_vm2 = vmmov 0  }
  0x18   : > { %321 = vperm.xlu0 %929, %v303_v3   ;;  %930 = vset.pattern.permute.xlu1 %v993_v2  ;;  %s762_s6 = sshll.u32 %s276_s21, 3  ;;  %v480_v10 = vld [vmem:[%s1246_s4 + $0x10] sm:$0xff]  ;;  %v479_v12 = vld [vmem:[%s1246_s4 + $0x8] sm:$0xff]  ;;  %v478_v13 = vld [vmem:[%s1246_s4] sm:$0xff] }
  0x19   : > { %311 = vperm.xlu1 %930, %v301_v4   ;;  %s1108_s10 = scalar_lea.vmem %s1242_s0, %s762_s6  ;;  %v605_v15 = vld [vmem:[#allocation2] sm:$0x1]  ;;  %v297_v28 = vld [vmem:[%s1243_s1 + $0x8] sm:$0xff]  ;;  %v298_v29 = vld [vmem:[%s1243_s1 + $0x10] sm:$0xff]  ;;  %s702_s6 = sshll.u32 %s273_s25, 4  ;;  %s703_s6 = int_to_ptr.vmem [resolvable:$true] %s702_s6 }
  0x1a   : > { %v295_v7 = vld [vmem:[%s1108_s10 + $0x78] sm:$0xff]  ;;  %v294_v8 = vld [vmem:[%s1108_s10 + $0x70] sm:$0xff]  ;;  %v293_v11 = vld [vmem:[%s1108_s10 + $0x68] sm:$0xff]  ;;  %s931_s16 = scalar_lea.vmem %s703_s6, 16  ;;  %p938_p0 = scmp.lt.s32.totalorder %s703_s6, %s936_s18 }
  0x1b   : > { %824 = vmatprep.subr.msk.mxu0 %vm324_vm0, %v295_v7  ;;  %v292_v14 = vld [vmem:[%s1108_s10 + $0x60] sm:$0xff]  ;;  %v291_v16 = vld [vmem:[%s1108_s10 + $0x58] sm:$0xff]  ;;  %v290_v17 = vld [vmem:[%s1108_s10 + $0x50] sm:$0xff]  ;;  %p932_p11 = scmp.ne.s32.totalorder %s703_s6, %s931_s16  ;;  %p939_p1 = scmp.lt.s32.totalorder %s937_s19, %s931_s16 }
  0x1c   : > { %316 = vperm.xlu0 %929, %v302_v5   ;;  %825 = vmatpush3.xpose.msk.msra.mxu0 %vm324_vm0, %v295_v7  ;;  %v289_v18 = vld [vmem:[%s1108_s10 + $0x48] sm:$0xff]  ;;  %v288_v19 = vld [vmem:[%s1108_s10 + $0x40] sm:$0xff]  ;;  %v287_v20 = vld [vmem:[%s1108_s10 + $0x38] sm:$0xff]  ;;  %v611_v5 = vlaneseq }
  0x1d   : > { %306 = vperm.xlu1 %930, %v300_v6   ;;  %826 = vmatprep.subr.msk.mxu0 %vm324_vm0, %v294_v8  ;;  %v286_v21 = vld [vmem:[%s1108_s10 + $0x30] sm:$0xff]  ;;  %v285_v22 = vld [vmem:[%s1108_s10 + $0x28] sm:$0xff]  ;;  %v284_v23 = vld [vmem:[%s1108_s10 + $0x20] sm:$0xff]  ;;  %p933_p12 = pnand %p932_p11, %p1075_p5  ;;  %p940_p2 = por %p939_p1, %p938_p0 }
  0x1e   : > { %v283_v24 = vld [vmem:[%s1108_s10 + $0x18] sm:$0xff]  ;;  %v282_v25 = vld [vmem:[%s1108_s10 + $0x10] sm:$0xff]  ;;  %v281_v26 = vld [vmem:[%s1108_s10 + $0x8] sm:$0xff]  ;;  %v612_v6 = vshrl.u32 %v611_v5, 7 }
  0x1f   : > { %v280_v27 = vld [vmem:[%s1108_s10] sm:$0xff]  ;;  %v299_v30 = vld [vmem:[%s1243_s1 + $0x18] sm:$0xff]  ;;  %v475_v48 = vld [vmem:[%s1245_s3 + $0x8] sm:$0xff]  ;;  %s1207_s10 = scalar_lea.hbm %s1249_s7, %s1085_s14  ;;  %p934_p13 = pneg %p933_p12 }
  0x20   : > { %499 = vperm.xlu0 %929, %v481_v9   ;;  %827 = vmatpush3.xpose.msk.msra.mxu0 %vm324_vm0, %v294_v8  ;;  %v474_v31 = vld [vmem:[%s1245_s3] sm:$0xff]  ;;  %v476_v49 = vld [vmem:[%s1245_s3 + $0x10] sm:$0xff]  ;;  %v477_v50 = vld [vmem:[%s1245_s3 + $0x18] sm:$0xff]  ;;  %v613_v7 = vsub.s32 0, %v612_v6 }
  0x21   : > { %494 = vperm.xlu1 %930, %v480_v10   ;;  %828 = vmatprep.subr.msk.mxu0 %vm324_vm0, %v293_v11  ;;  %v604_v4 = vld [vmem:[%s1247_s5] sm:$0x1]  ;;  %p941_p3 = pnand %p940_p2, %p934_p13 }
  0x22   : > { %870 = vmatprep.mubr.msk.f32.mxu1 %vm502_vm1, %v474_v31 }
  0x24   : > { %489 = vperm.xlu0 %929, %v479_v12   ;;  %829 = vmatpush3.xpose.msk.msra.mxu0 %vm324_vm0, %v293_v11 }
  0x25   : > { %484 = vperm.xlu1 %930, %v478_v13   ;;  %830 = vmatprep.subr.msk.mxu0 %vm324_vm0, %v292_v14 }
  0x28   : > { %608 = vperm.xlu0 %929, %v605_v15   ;;  %831 = vmatpush3.xpose.msk.msra.mxu0 %vm324_vm0, %v292_v14 }
  0x29   : > { %832 = vmatprep.subr.msk.mxu0 %vm324_vm0, %v291_v16 }
  0x2c   : > { %833 = vmatpush3.xpose.msk.msra.mxu0 %vm324_vm0, %v291_v16 }
  0x2d   : > { %834 = vmatprep.subr.msk.mxu0 %vm324_vm0, %v290_v17 }
  0x30   : > { %835 = vmatpush3.xpose.msk.msra.mxu0 %vm324_vm0, %v290_v17 }
  0x31   : > { %836 = vmatprep.subr.msk.mxu0 %vm324_vm0, %v289_v18 }
  0x34   : > { %837 = vmatpush3.xpose.msk.msra.mxu0 %vm324_vm0, %v289_v18 }
  0x35   : > { %838 = vmatprep.subr.msk.mxu0 %vm324_vm0, %v288_v19 }
  0x38   : > { %839 = vmatpush3.xpose.msk.msra.mxu0 %vm324_vm0, %v288_v19 }
  0x39   : > { %840 = vmatprep.subr.msk.mxu0 %vm324_vm0, %v287_v20 }
  0x3c   : > { %841 = vmatpush3.xpose.msk.msra.mxu0 %vm324_vm0, %v287_v20 }
  0x3d   : > { %842 = vmatprep.subr.msk.mxu0 %vm324_vm0, %v286_v21 }
  0x40   : > { %843 = vmatpush3.xpose.msk.msra.mxu0 %vm324_vm0, %v286_v21 }
  0x41   : > { %844 = vmatprep.subr.msk.mxu0 %vm324_vm0, %v285_v22 }
  0x44   : > { %845 = vmatpush3.xpose.msk.msra.mxu0 %vm324_vm0, %v285_v22 }
  0x45   : > { %846 = vmatprep.subr.msk.mxu0 %vm324_vm0, %v284_v23 }
  0x48   : > { %847 = vmatpush3.xpose.msk.msra.mxu0 %vm324_vm0, %v284_v23 }
  0x49   : > { %848 = vmatprep.subr.msk.mxu0 %vm324_vm0, %v283_v24 }
  0x4c   : > { %849 = vmatpush3.xpose.msk.msra.mxu0 %vm324_vm0, %v283_v24 }
  0x4d   : > { %850 = vmatprep.subr.msk.mxu0 %vm324_vm0, %v282_v25 }
  0x50   : > { %851 = vmatpush3.xpose.msk.msra.mxu0 %vm324_vm0, %v282_v25 }
  0x51   : > { %852 = vmatprep.subr.msk.mxu0 %vm324_vm0, %v281_v26 }
  0x54   : > { %853 = vmatpush3.xpose.msk.msra.mxu0 %vm324_vm0, %v281_v26 }
  0x55   : > { %854 = vmatprep.subr.msk.mxu0 %vm324_vm0, %v280_v27 }
  0x58   : > { %855 = vmatpush3.xpose.msk.msra.mxu0 %vm324_vm0, %v280_v27 }
  0x5b   : > { %857 = vmatmul.mubr.msk.f32.vlgmr.msra.gmra.mxu0 %vm324_vm0, %v297_v28 }
  0x5c   : > { %859 = vmatprep.mubr.msk.f32.mxu0 %vm324_vm0, %v298_v29 }
  0x5f   : > { %860 = vmatmul.mubr.msk.f32.gmra.mxu0 %vm324_vm0, %v299_v30 }
  0x93   : > { %v322_v32 = vpop.permute.xlu0 %321 }
  0x94   : > { %v312_v34 = vpop.permute.xlu1 %311 }
  0x97   : > { %v317_v38 = vpop.permute.xlu0 %316 }
  0x98   : > { %v307_v43 = vpop.permute.xlu1 %306 }
  0x9b   : > { %v500_v52 = vpop.permute.xlu0 %499 }
  0x9c   : > { %v495_v54 = vpop.permute.xlu1 %494 }
  0x9f   : > { %v490_v58 = vpop.permute.xlu0 %489 }
  0xa0   : > { %v485_v63 = vpop.permute.xlu1 %484 }
  0xa3   : > { %v609_v8 = vpop.permute.xlu0 %608 }
  0xa4   : > { %v614_v9 = vrot.slane %v609_v8, %v613_v7 }
 0x11b   : > { %v858_v33 = vpop.f32.mrf.mxu0 }
 0x11c   : > { %v457_v40 = vadd.f32 %v858_v33, %v312_v34 }
 0x11d   : > { %v451_v35 = vpop.f32.mrf.mxu0 }
 0x11e   : > { %v452_v44 = vadd.f32 %v451_v35, %v307_v43  ;;  %v471_v46 = vmax.f32 %v457_v40, 0.0 }
 0x11f   : > { %v861_v36 = vpop.f32.mrf.mxu0 }
 0x120   : > { %v467_v37 = vadd.f32 %v861_v36, %v322_v32  ;;  %v470_v47 = vmax.f32 %v452_v44, 0.0 }
 0x121   : > { %v461_v39 = vpop.f32.mrf.mxu0 }
 0x122   : > { %v473_v41 = vmax.f32 %v467_v37, 0.0  ;;  %v462_v42 = vadd.f32 %v461_v39, %v317_v38 }
 0x124   : > { %v472_v45 = vmax.f32 %v462_v42, 0.0  ;;  %862 = vmatprep.subr.mxu1 %v473_v41 }
 0x125   : > { %863 = vmatpush3.msra.mxu1 %v473_v41 }
 0x126   : > { %864 = vmatprep.subr.mxu1 %v472_v45 }
 0x127   : > { %865 = vmatpush3.msra.mxu1 %v472_v45 }
 0x128   : > { %866 = vmatprep.subr.mxu1 %v471_v46 }
 0x129   : > { %867 = vmatpush3.msra.mxu1 %v471_v46 }
 0x12a   : > { %868 = vmatprep.subr.mxu1 %v470_v47 }
 0x12b   : > { %869 = vmatpush3.msra.mxu1 %v470_v47 }
 0x12c   : > { %871 = vmatmul.mubr.msk.f32.vlgmr.msra.gmra.mxu1 %vm502_vm1, %v475_v48  ;;  %876 = vmatprep.subr.mxu1 %v994_v51 }
 0x12d   : > { %873 = vmatprep.mubr.msk.f32.mxu1 %vm502_vm1, %v476_v49 }
 0x130   : > { %874 = vmatmul.mubr.msk.f32.gmra.mxu1 %vm502_vm1, %v477_v50 }
 0x131   : > { %884 = vmatprep.mubr.msk.f32.mxu1 %vm995_vm2, %v994_v51 }
 0x1ec   : > { %v872_v53 = vpop.f32.mrf.mxu1 }
 0x1ed   : > { %v587_v60 = vadd.f32 %v872_v53, %v490_v58 }
 0x1ee   : > { %v581_v55 = vpop.f32.mrf.mxu1 }
 0x1ef   : > { %v582_v0 = vadd.f32 %v581_v55, %v485_v63  ;;  %v601_v2 = vmax.f32 %v587_v60, 0.0 }
 0x1f0   : > { %v875_v56 = vpop.f32.mrf.mxu1 }
 0x1f1   : > { %v597_v57 = vadd.f32 %v875_v56, %v500_v52  ;;  %v600_v3 = vmax.f32 %v582_v0, 0.0 }
 0x1f2   : > { %v591_v59 = vpop.f32.mrf.mxu1 }
 0x1f3   : > { %v603_v61 = vmax.f32 %v597_v57, 0.0  ;;  %v592_v62 = vadd.f32 %v591_v59, %v495_v54 }
 0x1f5   : > { %v602_v1 = vmax.f32 %v592_v62, 0.0  ;;  %877 = vmatpush3.msra.mxu1 %v603_v61 }
 0x1f6   : > { %878 = vmatprep.subr.mxu1 %v994_v51 }
 0x1f7   : > { %879 = vmatpush3.msra.mxu1 %v602_v1 }
 0x1f8   : > { %880 = vmatprep.subr.mxu1 %v994_v51 }
 0x1f9   : > { %881 = vmatpush3.msra.mxu1 %v601_v2 }
 0x1fa   : > { %882 = vmatprep.subr.mxu1 %v994_v51 }
 0x1fb   : > { %883 = vmatpush3.msra.mxu1 %v600_v3 }
 0x1fc   : > { %885 = vmatmul.mubr.msk.f32.vlgmr.msra.gmra.mxu1 %vm502_vm1, %v604_v4 }
 0x2bc   : > { %v684_v10 = vpop.f32.mrf.mxu1 }
 0x2bd   : > { %v685_v11 = vadd.f32 %v684_v10, %v614_v9 }
 0x2be   : > { %v886_v12 = vpop.f32.mrf.mxu1 }
 0x2bf   : > { %688 = vst [vmem:[%s273_s25] sm:$0x1] %v685_v11 }
 0x2c0   : > { %944 = shalt.err (!%p941_p3)
}
 0x2c1   : > { %s945_s14 = scalar_lea.hbm %s1207_s10, 16  ;;  %s949_s22 = scalar_lea.hbm %s1249_s7, 32 }
 0x2c2   : > { %p946_p4 = scmp.ne.s32.totalorder %s1207_s10, %s945_s14  ;;  %p950_p9 = scmp.lt.s32.totalorder %s1207_s10, %s1249_s7 }
 0x2c3   : > { %p951_p10 = scmp.lt.s32.totalorder %s949_s22, %s945_s14 }
 0x2c4   : > { %p947_p7 = pnand %p946_p4, %p1075_p5 }
 0x2c5   : > { %p952_p11 = por %p951_p10, %p950_p9 }
 0x2c6   : > { %p948_p8 = pneg %p947_p7 }
 0x2c8   : > { %p953_p12 = pnand %p952_p11, %p948_p8 }
 0x2ca   : > { %956 = shalt.err (!%p953_p12)
}
 0x2cb   : > { %887 = dma.vmem_to_hbm [thread:$0]  (%p1075_p5), %s703_s6, 16, %s1207_s10, %s690_s15  }
 0x2cc PF: > { %p893_p13 = scmp.ge.s32.totalorder %s991_s29, 2  ;;  %s714_s25 = sand.u32 1, %s979_s26  }
 0x2cd   : > { %s715_s30 = scalar_lea.sflag [#allocation4], %s714_s25 }
 0x2ce   : > { %p890_p0 = pnand %p893_p13, %p1079_p6 }
 0x2d0   : > { %p891_p1 = pneg %p890_p0 }
 0x2d2   : > { %974 = dma.done.wait (%p891_p1), %s715_s30, 16  }
 0x2d3   : > { %976 = vsyncadd (%p891_p1), %s715_s30, 4294967280  ;;  %p19_p2 = scmp.ge.s32.totalorder %s1063_s8, 4   ;;  %s1252_s26 = smov %s983_s27 }
 0x2d4   : > { %s1253_s27 = smov %s987_s28  ;;  %s1254_s28 = smov %s1073_s11 }
 0x2d5   : > { %s1255_s29 = smov %s1063_s8  ;;  %21 = sbr.rel (!%p19_p2) target bundleno = 6 (0x6), region = 83 }
 0x2da   :  { %719 = vsyncpa [#allocation4], 1 }
 0x2db   :  { %721 = vsyncpa [#allocation4 + $0x1], 1 }

</bundles_post_ra>
